<compile_context>
chip_gen: v5e
topology: v5e:2x2
jax: 0.10.0
libtpu: 0.0.40
codegen_flags: <defaults>
</compile_context>

<pallas_src>
import jax
import jax.numpy as jnp
import numpy as np
from jax.experimental import pallas as pl
from jax.experimental.pallas import tpu as pltpu


# ----------------------------- Pallas kernel -------------------------------

def _bilstm_kernel(x_ref, sel_ref, w_ref, p_ref, out_ref, gx_ref):
    # Static shapes.
    T, BT, H2 = sel_ref.shape          # timesteps, batch tile, 2*hidden
    E2 = x_ref.shape[1]                # 2*embedding
    w_dtype = w_ref.dtype

    # Parameter views (loaded once, hoisted out of the recurrence).
    wih = w_ref[0:E2, :]               # (2E, 8H)  input-proj, both directions
    whh = w_ref[E2:, :]                # (2H, 8H)  block-diag recurrent weights
    b = p_ref[0:1, :]                  # (1, 8H)   fused LSTM bias (b_ih + b_hh)
    wrow = p_ref[1:2, 0:H2]            # (1, 2H)   Linear(2H, 1) weight row
    bout = p_ref[2:3, 0:1]             # (1, 1)    Linear(2H, 1) bias

    # Hoisted input projection: all timesteps, both directions, one MXU pass,
    # result parked in VMEM scratch so the loop only reads aligned ref views.
    gx_ref[...] = (jnp.dot(x_ref[...], wih,
                           preferred_element_type=jnp.float32) + b)

    h = jnp.zeros((BT, H2), jnp.float32)       # [h_fwd | h_bwd]
    c = jnp.zeros((BT, H2), jnp.float32)       # [c_fwd | c_bwd]
    h_fin = jnp.zeros((BT, H2), jnp.float32)   # state at t == length-1

    def sigm(v):
        # sigmoid(x) = 0.5*(tanh(0.5*x)+1): 1 EUP push + 2 VPU ops.
        return 0.5 * jnp.tanh(0.5 * v) + 0.5

    # Static unrolled time recurrence (T is a compile-time constant).
    for t in range(T):
        gates = gx_ref[pl.ds(t * BT, BT), :] + jnp.dot(
            h.astype(w_dtype), whh, preferred_element_type=jnp.float32)
        i = sigm(gates[:, 0 * H2:1 * H2])
        f = sigm(gates[:, 1 * H2:2 * H2])
        g = jnp.tanh(gates[:, 2 * H2:3 * H2])
        o = sigm(gates[:, 3 * H2:4 * H2])
        c = f * c + i * g
        h = o * jnp.tanh(c)
        # Pre-broadcast one-hot selector: plain VPU multiply-accumulate.
        h_fin = h_fin + sel_ref[t] * h

    # Output head: Linear(2H, 1) as VPU multiply + lane reduction.
    # (Output stays (BT, 1); pad to lane-dense only when B gets large.)
    out_ref[...] = jnp.sum(h_fin * wrow, axis=-1, keepdims=True) + bout


def bilstm_discriminator_pallas(x_tbe, sel, w_all, params, *, batch_tile=None,
                                mxu_dtype=None):
    """x_tbe: (T, B_pad, 2E) fused fwd/bwd embeddings, time-major.
       sel:   (T, B_pad, 2H) pre-broadcast one-hot length selector.
       w_all: (2E + 2H, 8H)  [W_ih ; W_hh] fused block-diagonal weights.
       params:(8, 8H)        packed {bias row, output weight row, output bias}."""
    T, Bp, E2 = x_tbe.shape
    H2 = sel.shape[2]
    G = w_all.shape[1]
    if batch_tile is None:
        batch_tile = Bp if Bp <= 256 else 256
    assert Bp % 8 == 0 and batch_tile % 8 == 0 and Bp % batch_tile == 0, (
        "pad the batch to a multiple of 8 and pick a divisor batch_tile")
    nbt = Bp // batch_tile

    # Batch-tile-major layout so each grid step reads one contiguous
    # (T*BT, 2E) slab (no in-kernel reshapes).
    x2d = (x_tbe.reshape(T, nbt, batch_tile, E2)
                .transpose(1, 0, 2, 3)
                .reshape(nbt * T * batch_tile, E2))
    if mxu_dtype is not None:
        # v5e: bf16-only MXU; also halves DMA bytes on v6e/v7x.
        x2d = x2d.astype(mxu_dtype)
        w_all = w_all.astype(mxu_dtype)

    return pl.pallas_call(
        _bilstm_kernel,
        out_shape=jax.ShapeDtypeStruct((Bp, 1), jnp.float32),
        grid=(nbt,),
        in_specs=[
            pl.BlockSpec((T * batch_tile, E2), lambda i: (i, 0)),   # embeddings
            pl.BlockSpec((T, batch_tile, H2), lambda i: (0, i, 0)), # selector
            pl.BlockSpec(w_all.shape, lambda i: (0, 0)),            # weights
            pl.BlockSpec(params.shape, lambda i: (0, 0)),           # small params
        ],
        out_specs=pl.BlockSpec((batch_tile, 1), lambda i: (i, 0)),
        scratch_shapes=[pltpu.VMEM((T * batch_tile, G), jnp.float32)],
        compiler_params=pltpu.CompilerParams(
            dimension_semantics=("parallel",)),
    )(x2d, sel, w_all, params)


# --------------------- weight fusion / JAX glue / reference -----------------

def build_fused_weights(wih_f, whh_f, b_f, wih_b, whh_b, b_b):
    """Block-diagonal fwd+bwd weights with gate-interleaved columns:
       columns = [i_f i_b | f_f f_b | g_f g_b | o_f o_b], each block width H."""
    E = wih_f.shape[0]
    H = whh_f.shape[0]
    wih_cat = jnp.zeros((2 * E, 8 * H), jnp.float32)
    whh_cat = jnp.zeros((2 * H, 8 * H), jnp.float32)
    b_cat = jnp.zeros((1, 8 * H), jnp.float32)
    for gate in range(4):
        col_f = slice(gate * 2 * H, gate * 2 * H + H)
        col_b = slice(gate * 2 * H + H, (gate + 1) * 2 * H)
        src = slice(gate * H, (gate + 1) * H)
        wih_cat = wih_cat.at[:E, col_f].set(wih_f[:, src])
        wih_cat = wih_cat.at[E:, col_b].set(wih_b[:, src])
        whh_cat = whh_cat.at[:H, col_f].set(whh_f[:, src])
        whh_cat = whh_cat.at[H:, col_b].set(whh_b[:, src])
        b_cat = b_cat.at[:, col_f].set(b_f[:, src])
        b_cat = b_cat.at[:, col_b].set(b_b[:, src])
    return wih_cat, whh_cat, b_cat


def get_mask(tokens):
    # alphabet.get_mask: 1 for real tokens, 0 for PAD (PAD id == 0).
    return (tokens != 0).astype(jnp.int32)


def get_length(tokens):
    # alphabet.get_length
    return get_mask(tokens).sum(axis=1)


def reverse_sequence(tokens, mask):
    # Mirrors BiLSTMDiscriminator.reverse_sequence (torch.gather semantics).
    idx = jnp.cumsum(mask, axis=1)
    idx = idx.max(axis=1, keepdims=True) - idx
    return jnp.take_along_axis(tokens, idx, axis=1)


def lstm_ref(x_bte, wih, whh, b, H):
    # Pure-JAX single-layer batch_first LSTM (PyTorch gate order i,f,g,o).
    B, T, E = x_bte.shape

    def step(carry, x_t):
        h, c = carry
        gates = x_t @ wih + h @ whh + b
        i = jax.nn.sigmoid(gates[:, 0:H])
        f = jax.nn.sigmoid(gates[:, H:2 * H])
        g = jnp.tanh(gates[:, 2 * H:3 * H])
        o = jax.nn.sigmoid(gates[:, 3 * H:4 * H])
        c = f * c + i * g
        h = o * jnp.tanh(c)
        return (h, c), h

    init = (jnp.zeros((B, H), jnp.float32), jnp.zeros((B, H), jnp.float32))
    _, hs = jax.lax.scan(step, init, jnp.transpose(x_bte, (1, 0, 2)))
    return jnp.transpose(hs, (1, 0, 2))     # (B, T, H)


def forward_reference(tokens, emb, wih_f, whh_f, b_f, wih_b, whh_b, b_b,
                      wout, b_out, H):
    mask = get_mask(tokens)
    lengths = get_length(tokens)
    rev = reverse_sequence(tokens, mask)
    fwd_e = emb[tokens]
    bwd_e = emb[rev]
    fwd_out = lstm_ref(fwd_e, wih_f, whh_f, b_f, H)
    bwd_out = lstm_ref(bwd_e, wih_b, whh_b, b_b, H)
    idx = (lengths - 1)[:, None, None]
    fwd_hs = jnp.take_along_axis(fwd_out, idx, axis=1)[:, 0]   # (B, H)
    bwd_hs = jnp.take_along_axis(bwd_out, idx, axis=1)[:, 0]   # (B, H)
    return jnp.concatenate([fwd_hs, bwd_hs], axis=1) @ wout + b_out


# --------------------------------- main --------------------------------------

if __name__ == "__main__":
    B, T, E, H, VOCAB = 4, 8, 16, 32, 11

    # Deterministic "alphabet" encoded sequences (0 = PAD at the end).
    tokens = jnp.array([[3, 1, 4, 1, 5, 0, 0, 0],
                        [2, 7, 1, 8, 2, 8, 1, 0],
                        [9, 3, 0, 0, 0, 0, 0, 0],
                        [5, 5, 5, 5, 5, 5, 5, 5]], dtype=jnp.int32)

    # Deterministic parameter init (shapes implied by the PyTorch module).
    key = jax.random.PRNGKey(0)
    ks = jax.random.split(key, 10)
    s = 1.0 / np.sqrt(H)
    emb    = jax.random.normal(ks[0], (VOCAB, E), jnp.float32) * 0.1
    wih_f  = jax.random.uniform(ks[1], (E, 4 * H), jnp.float32, -s, s)
    whh_f  = jax.random.uniform(ks[2], (H, 4 * H), jnp.float32, -s, s)
    b_f    = jax.random.uniform(ks[3], (1, 4 * H), jnp.float32, -s, s)  # b_ih + b_hh merged
    wih_b  = jax.random.uniform(ks[4], (E, 4 * H), jnp.float32, -s, s)
    whh_b  = jax.random.uniform(ks[5], (H, 4 * H), jnp.float32, -s, s)
    b_b    = jax.random.uniform(ks[6], (1, 4 * H), jnp.float32, -s, s)
    wout   = jax.random.uniform(ks[7], (2 * H, 1), jnp.float32, -s, s)  # Linear(2H,1).weight.T
    b_out  = jax.random.uniform(ks[8], (1, 1), jnp.float32, -s, s)

    # Glue: mask / lengths / reversal / embedding lookup (matches the module).
    mask = get_mask(tokens)
    lengths = get_length(tokens)
    rev_tokens = reverse_sequence(tokens, mask)
    fwd_emb = emb[tokens]          # (B, T, E)
    bwd_emb = emb[rev_tokens]      # (B, T, E)

    # Pad the batch to a multiple of 8 so every recurrent tile is sublane-dense.
    B_pad = ((B + 7) // 8) * 8
    pad_b = B_pad - B

    # Time-major fused embeddings, batch-padded: (T, B_pad, 2E).
    x_cat = jnp.concatenate([fwd_emb, bwd_emb], axis=-1)        # (B, T, 2E)
    x_tbe = jnp.transpose(x_cat, (1, 0, 2))                     # (T, B, 2E)
    x_tbe = jnp.pad(x_tbe, ((0, 0), (0, pad_b), (0, 0)))

    # Length-selection one-hot, pre-broadcast on the host to (T, B_pad, 2H).
    sel_tb = (jnp.arange(T)[:, None] == (lengths - 1)[None, :]).astype(jnp.float32)
    sel_tb = jnp.pad(sel_tb, ((0, 0), (0, pad_b)))               # (T, B_pad)
    sel = jnp.broadcast_to(sel_tb[:, :, None], (T, B_pad, 2 * H))

    # Fused block-diagonal fwd+bwd weights (gate-interleaved columns), stacked
    # into a single weight slab, plus one packed small-parameter tile.
    wih_cat, whh_cat, b_cat = build_fused_weights(
        wih_f, whh_f, b_f, wih_b, whh_b, b_b)
    w_all = jnp.concatenate([wih_cat, whh_cat], axis=0)          # (2E+2H, 8H)
    params = jnp.zeros((8, 8 * H), jnp.float32)
    params = params.at[0, :].set(b_cat[0])                       # LSTM bias
    params = params.at[1, :2 * H].set(wout[:, 0])                # output weight row
    params = params.at[2, 0].set(b_out[0, 0])                    # output bias

    # f32 path for the numeric check; pass mxu_dtype=jnp.bfloat16 on v5e
    # (relax tolerances accordingly).
    out_pad = bilstm_discriminator_pallas(x_tbe, sel, w_all, params)
    out_pad = jax.block_until_ready(out_pad)
    out = np.asarray(out_pad)[:B]

    ref = forward_reference(tokens, emb, wih_f, whh_f, b_f,
                            wih_b, whh_b, b_b, wout, b_out, H)
    ref = np.asarray(jax.block_until_ready(ref))

    if not np.allclose(out, ref, rtol=1e-4, atol=1e-4):
        raise AssertionError(f"mismatch:\nkernel={out}\nref={ref}")

    print("KERNEL_OK")
</pallas_src>

<mosaic_0001>
module attributes {stable_mosaic.version = 11 : i64} {
  func.func @_bilstm_kernel(%arg0: i32, %arg1: memref<64x32xf32, #tpu.memory_space<vmem>>, %arg2: memref<8x8x64xf32, #tpu.memory_space<vmem>>, %arg3: memref<96x256xf32, #tpu.memory_space<vmem>>, %arg4: memref<8x256xf32, #tpu.memory_space<vmem>>, %arg5: memref<8x1xf32, #tpu.memory_space<vmem>>, %arg6: memref<64x256xf32, #tpu.memory_space<vmem>>) attributes {dimension_semantics = [#tpu.dimension_semantics<parallel>], iteration_bounds = array<i64: 1>, scalar_prefetch = 0 : i64, scratch_operands = 1 : i64, tpu.core_type = #tpu.core_type<tc>, window_params = [{transform_indices = @transform_0, window_bounds = array<i64: 64, 32>}, {transform_indices = @transform_1, window_bounds = array<i64: 8, 8, 64>}, {pipeline_mode = #tpu.pipeline_mode<synchronous>, transform_indices = @transform_2, window_bounds = array<i64: 96, 256>}, {pipeline_mode = #tpu.pipeline_mode<synchronous>, transform_indices = @transform_3, window_bounds = array<i64: 8, 256>}, {transform_indices = @transform_4, window_bounds = array<i64: 8, 1>}]} {
    %c0 = arith.constant 0 : index
    %c0_0 = arith.constant 0 : index
    %0 = vector.load %arg3[%c0, %c0_0] : memref<96x256xf32, #tpu.memory_space<vmem>>, vector<32x256xf32>
    %c32 = arith.constant 32 : index
    %c0_1 = arith.constant 0 : index
    %1 = vector.load %arg3[%c32, %c0_1] : memref<96x256xf32, #tpu.memory_space<vmem>>, vector<64x256xf32>
    %c0_2 = arith.constant 0 : index
    %c0_3 = arith.constant 0 : index
    %2 = vector.load %arg4[%c0_2, %c0_3] : memref<8x256xf32, #tpu.memory_space<vmem>>, vector<1x256xf32>
    %c1 = arith.constant 1 : index
    %c0_4 = arith.constant 0 : index
    %3 = vector.load %arg4[%c1, %c0_4] : memref<8x256xf32, #tpu.memory_space<vmem>>, vector<1x64xf32>
    %c2 = arith.constant 2 : index
    %c0_5 = arith.constant 0 : index
    %4 = vector.load %arg4[%c2, %c0_5] : memref<8x256xf32, #tpu.memory_space<vmem>>, vector<1x1xf32>
    %c0_6 = arith.constant 0 : index
    %c0_7 = arith.constant 0 : index
    %5 = vector.load %arg1[%c0_6, %c0_7] : memref<64x32xf32, #tpu.memory_space<vmem>>, vector<64x32xf32>
    %cst = arith.constant dense<0.000000e+00> : vector<64x256xf32>
    %6 = tpu.matmul %5, %0, %cst {dimension_numbers = #tpu.dot_dimension_numbers<[1], [0], [0], [1], [0, 0, 1, 1], [], []>} : vector<64x32xf32>, vector<32x256xf32>, vector<64x256xf32> -> vector<64x256xf32>
    %7 = vector.broadcast %2 : vector<1x256xf32> to vector<64x256xf32>
    %8 = arith.addf %6, %7 : vector<64x256xf32>
    %c0_8 = arith.constant 0 : index
    %c0_9 = arith.constant 0 : index
    %9 = vector.load %arg6[%c0_8, %c0_9] : memref<64x256xf32, #tpu.memory_space<vmem>>, vector<64x256xf32>
    tpu.vector_store %arg6[%c0_8, %c0_9], %8 {strides = array<i32>} : memref<64x256xf32, #tpu.memory_space<vmem>>, vector<64x256xf32>,
    %cst_10 = arith.constant 0.000000e+00 : f32
    %10 = vector.broadcast %cst_10 : f32 to vector<8x64xf32>
    %cst_11 = arith.constant 0.000000e+00 : f32
    %11 = vector.broadcast %cst_11 : f32 to vector<8x64xf32>
    %cst_12 = arith.constant 0.000000e+00 : f32
    %12 = vector.broadcast %cst_12 : f32 to vector<8x64xf32>
    %c0_13 = arith.constant 0 : index
    %c0_14 = arith.constant 0 : index
    %13 = vector.load %arg6[%c0_13, %c0_14] : memref<64x256xf32, #tpu.memory_space<vmem>>, vector<8x256xf32>
    %cst_15 = arith.constant dense<0.000000e+00> : vector<8x256xf32>
    %14 = tpu.matmul %10, %1, %cst_15 {dimension_numbers = #tpu.dot_dimension_numbers<[1], [0], [0], [1], [0, 0, 1, 1], [], []>} : vector<8x64xf32>, vector<64x256xf32>, vector<8x256xf32> -> vector<8x256xf32>
    %15 = arith.addf %13, %14 : vector<8x256xf32>
    %16 = vector.extract_strided_slice %15 {offsets = [0, 0], sizes = [8, 64], strides = [1, 1]} : vector<8x256xf32> to vector<8x64xf32>
    %cst_16 = arith.constant 5.000000e-01 : f32
    %17 = vector.broadcast %cst_16 : f32 to vector<8x64xf32>
    %18 = arith.mulf %17, %16 : vector<8x64xf32>
    %19 = math.tanh %18 : vector<8x64xf32>
    %cst_17 = arith.constant 5.000000e-01 : f32
    %20 = vector.broadcast %cst_17 : f32 to vector<8x64xf32>
    %21 = arith.mulf %20, %19 : vector<8x64xf32>
    %cst_18 = arith.constant 5.000000e-01 : f32
    %22 = vector.broadcast %cst_18 : f32 to vector<8x64xf32>
    %23 = arith.addf %21, %22 : vector<8x64xf32>
    %24 = vector.extract_strided_slice %15 {offsets = [0, 64], sizes = [8, 64], strides = [1, 1]} : vector<8x256xf32> to vector<8x64xf32>
    %cst_19 = arith.constant 5.000000e-01 : f32
    %25 = vector.broadcast %cst_19 : f32 to vector<8x64xf32>
    %26 = arith.mulf %25, %24 : vector<8x64xf32>
    %27 = math.tanh %26 : vector<8x64xf32>
    %cst_20 = arith.constant 5.000000e-01 : f32
    %28 = vector.broadcast %cst_20 : f32 to vector<8x64xf32>
    %29 = arith.mulf %28, %27 : vector<8x64xf32>
    %cst_21 = arith.constant 5.000000e-01 : f32
    %30 = vector.broadcast %cst_21 : f32 to vector<8x64xf32>
    %31 = arith.addf %29, %30 : vector<8x64xf32>
    %32 = vector.extract_strided_slice %15 {offsets = [0, 128], sizes = [8, 64], strides = [1, 1]} : vector<8x256xf32> to vector<8x64xf32>
    %33 = math.tanh %32 : vector<8x64xf32>
    %34 = vector.extract_strided_slice %15 {offsets = [0, 192], sizes = [8, 64], strides = [1, 1]} : vector<8x256xf32> to vector<8x64xf32>
    %cst_22 = arith.constant 5.000000e-01 : f32
    %35 = vector.broadcast %cst_22 : f32 to vector<8x64xf32>
    %36 = arith.mulf %35, %34 : vector<8x64xf32>
    %37 = math.tanh %36 : vector<8x64xf32>
    %cst_23 = arith.constant 5.000000e-01 : f32
    %38 = vector.broadcast %cst_23 : f32 to vector<8x64xf32>
    %39 = arith.mulf %38, %37 : vector<8x64xf32>
    %cst_24 = arith.constant 5.000000e-01 : f32
    %40 = vector.broadcast %cst_24 : f32 to vector<8x64xf32>
    %41 = arith.addf %39, %40 : vector<8x64xf32>
    %42 = arith.mulf %31, %11 : vector<8x64xf32>
    %43 = arith.mulf %23, %33 : vector<8x64xf32>
    %44 = arith.addf %42, %43 : vector<8x64xf32>
    %45 = math.tanh %44 : vector<8x64xf32>
    %46 = arith.mulf %41, %45 : vector<8x64xf32>
    %c0_25 = arith.constant 0 : index
    %c0_26 = arith.constant 0 : index
    %c0_27 = arith.constant 0 : index
    %47 = vector.load %arg2[%c0_25, %c0_26, %c0_27] : memref<8x8x64xf32, #tpu.memory_space<vmem>>, vector<1x8x64xf32>
    %48 = vector.shape_cast %47 : vector<1x8x64xf32> to vector<8x64xf32>
    %49 = arith.mulf %48, %46 : vector<8x64xf32>
    %50 = arith.addf %12, %49 : vector<8x64xf32>
    %c8 = arith.constant 8 : index
    %c0_28 = arith.constant 0 : index
    %51 = vector.load %arg6[%c8, %c0_28] : memref<64x256xf32, #tpu.memory_space<vmem>>, vector<8x256xf32>
    %cst_29 = arith.constant dense<0.000000e+00> : vector<8x256xf32>
    %52 = tpu.matmul %46, %1, %cst_29 {dimension_numbers = #tpu.dot_dimension_numbers<[1], [0], [0], [1], [0, 0, 1, 1], [], []>} : vector<8x64xf32>, vector<64x256xf32>, vector<8x256xf32> -> vector<8x256xf32>
    %53 = arith.addf %51, %52 : vector<8x256xf32>
    %54 = vector.extract_strided_slice %53 {offsets = [0, 0], sizes = [8, 64], strides = [1, 1]} : vector<8x256xf32> to vector<8x64xf32>
    %cst_30 = arith.constant 5.000000e-01 : f32
    %55 = vector.broadcast %cst_30 : f32 to vector<8x64xf32>
    %56 = arith.mulf %55, %54 : vector<8x64xf32>
    %57 = math.tanh %56 : vector<8x64xf32>
    %cst_31 = arith.constant 5.000000e-01 : f32
    %58 = vector.broadcast %cst_31 : f32 to vector<8x64xf32>
    %59 = arith.mulf %58, %57 : vector<8x64xf32>
    %cst_32 = arith.constant 5.000000e-01 : f32
    %60 = vector.broadcast %cst_32 : f32 to vector<8x64xf32>
    %61 = arith.addf %59, %60 : vector<8x64xf32>
    %62 = vector.extract_strided_slice %53 {offsets = [0, 64], sizes = [8, 64], strides = [1, 1]} : vector<8x256xf32> to vector<8x64xf32>
    %cst_33 = arith.constant 5.000000e-01 : f32
    %63 = vector.broadcast %cst_33 : f32 to vector<8x64xf32>
    %64 = arith.mulf %63, %62 : vector<8x64xf32>
    %65 = math.tanh %64 : vector<8x64xf32>
    %cst_34 = arith.constant 5.000000e-01 : f32
    %66 = vector.broadcast %cst_34 : f32 to vector<8x64xf32>
    %67 = arith.mulf %66, %65 : vector<8x64xf32>
    %cst_35 = arith.constant 5.000000e-01 : f32
    %68 = vector.broadcast %cst_35 : f32 to vector<8x64xf32>
    %69 = arith.addf %67, %68 : vector<8x64xf32>
    %70 = vector.extract_strided_slice %53 {offsets = [0, 128], sizes = [8, 64], strides = [1, 1]} : vector<8x256xf32> to vector<8x64xf32>
    %71 = math.tanh %70 : vector<8x64xf32>
    %72 = vector.extract_strided_slice %53 {offsets = [0, 192], sizes = [8, 64], strides = [1, 1]} : vector<8x256xf32> to vector<8x64xf32>
    %cst_36 = arith.constant 5.000000e-01 : f32
    %73 = vector.broadcast %cst_36 : f32 to vector<8x64xf32>
    %74 = arith.mulf %73, %72 : vector<8x64xf32>
    %75 = math.tanh %74 : vector<8x64xf32>
    %cst_37 = arith.constant 5.000000e-01 : f32
    %76 = vector.broadcast %cst_37 : f32 to vector<8x64xf32>
    %77 = arith.mulf %76, %75 : vector<8x64xf32>
    %cst_38 = arith.constant 5.000000e-01 : f32
    %78 = vector.broadcast %cst_38 : f32 to vector<8x64xf32>
    %79 = arith.addf %77, %78 : vector<8x64xf32>
    %80 = arith.mulf %69, %44 : vector<8x64xf32>
    %81 = arith.mulf %61, %71 : vector<8x64xf32>
    %82 = arith.addf %80, %81 : vector<8x64xf32>
    %83 = math.tanh %82 : vector<8x64xf32>
    %84 = arith.mulf %79, %83 : vector<8x64xf32>
    %c1_39 = arith.constant 1 : index
    %c0_40 = arith.constant 0 : index
    %c0_41 = arith.constant 0 : index
    %85 = vector.load %arg2[%c1_39, %c0_40, %c0_41] : memref<8x8x64xf32, #tpu.memory_space<vmem>>, vector<1x8x64xf32>
    %86 = vector.shape_cast %85 : vector<1x8x64xf32> to vector<8x64xf32>
    %87 = arith.mulf %86, %84 : vector<8x64xf32>
    %88 = arith.addf %50, %87 : vector<8x64xf32>
    %c16 = arith.constant 16 : index
    %c0_42 = arith.constant 0 : index
    %89 = vector.load %arg6[%c16, %c0_42] : memref<64x256xf32, #tpu.memory_space<vmem>>, vector<8x256xf32>
    %cst_43 = arith.constant dense<0.000000e+00> : vector<8x256xf32>
    %90 = tpu.matmul %84, %1, %cst_43 {dimension_numbers = #tpu.dot_dimension_numbers<[1], [0], [0], [1], [0, 0, 1, 1], [], []>} : vector<8x64xf32>, vector<64x256xf32>, vector<8x256xf32> -> vector<8x256xf32>
    %91 = arith.addf %89, %90 : vector<8x256xf32>
    %92 = vector.extract_strided_slice %91 {offsets = [0, 0], sizes = [8, 64], strides = [1, 1]} : vector<8x256xf32> to vector<8x64xf32>
    %cst_44 = arith.constant 5.000000e-01 : f32
    %93 = vector.broadcast %cst_44 : f32 to vector<8x64xf32>
    %94 = arith.mulf %93, %92 : vector<8x64xf32>
    %95 = math.tanh %94 : vector<8x64xf32>
    %cst_45 = arith.constant 5.000000e-01 : f32
    %96 = vector.broadcast %cst_45 : f32 to vector<8x64xf32>
    %97 = arith.mulf %96, %95 : vector<8x64xf32>
    %cst_46 = arith.constant 5.000000e-01 : f32
    %98 = vector.broadcast %cst_46 : f32 to vector<8x64xf32>
    %99 = arith.addf %97, %98 : vector<8x64xf32>
    %100 = vector.extract_strided_slice %91 {offsets = [0, 64], sizes = [8, 64], strides = [1, 1]} : vector<8x256xf32> to vector<8x64xf32>
    %cst_47 = arith.constant 5.000000e-01 : f32
    %101 = vector.broadcast %cst_47 : f32 to vector<8x64xf32>
    %102 = arith.mulf %101, %100 : vector<8x64xf32>
    %103 = math.tanh %102 : vector<8x64xf32>
    %cst_48 = arith.constant 5.000000e-01 : f32
    %104 = vector.broadcast %cst_48 : f32 to vector<8x64xf32>
    %105 = arith.mulf %104, %103 : vector<8x64xf32>
    %cst_49 = arith.constant 5.000000e-01 : f32
    %106 = vector.broadcast %cst_49 : f32 to vector<8x64xf32>
    %107 = arith.addf %105, %106 : vector<8x64xf32>
    %108 = vector.extract_strided_slice %91 {offsets = [0, 128], sizes = [8, 64], strides = [1, 1]} : vector<8x256xf32> to vector<8x64xf32>
    %109 = math.tanh %108 : vector<8x64xf32>
    %110 = vector.extract_strided_slice %91 {offsets = [0, 192], sizes = [8, 64], strides = [1, 1]} : vector<8x256xf32> to vector<8x64xf32>
    %cst_50 = arith.constant 5.000000e-01 : f32
    %111 = vector.broadcast %cst_50 : f32 to vector<8x64xf32>
    %112 = arith.mulf %111, %110 : vector<8x64xf32>
    %113 = math.tanh %112 : vector<8x64xf32>
    %cst_51 = arith.constant 5.000000e-01 : f32
    %114 = vector.broadcast %cst_51 : f32 to vector<8x64xf32>
    %115 = arith.mulf %114, %113 : vector<8x64xf32>
    %cst_52 = arith.constant 5.000000e-01 : f32
    %116 = vector.broadcast %cst_52 : f32 to vector<8x64xf32>
    %117 = arith.addf %115, %116 : vector<8x64xf32>
    %118 = arith.mulf %107, %82 : vector<8x64xf32>
    %119 = arith.mulf %99, %109 : vector<8x64xf32>
    %120 = arith.addf %118, %119 : vector<8x64xf32>
    %121 = math.tanh %120 : vector<8x64xf32>
    %122 = arith.mulf %117, %121 : vector<8x64xf32>
    %c2_53 = arith.constant 2 : index
    %c0_54 = arith.constant 0 : index
    %c0_55 = arith.constant 0 : index
    %123 = vector.load %arg2[%c2_53, %c0_54, %c0_55] : memref<8x8x64xf32, #tpu.memory_space<vmem>>, vector<1x8x64xf32>
    %124 = vector.shape_cast %123 : vector<1x8x64xf32> to vector<8x64xf32>
    %125 = arith.mulf %124, %122 : vector<8x64xf32>
    %126 = arith.addf %88, %125 : vector<8x64xf32>
    %c24 = arith.constant 24 : index
    %c0_56 = arith.constant 0 : index
    %127 = vector.load %arg6[%c24, %c0_56] : memref<64x256xf32, #tpu.memory_space<vmem>>, vector<8x256xf32>
    %cst_57 = arith.constant dense<0.000000e+00> : vector<8x256xf32>
    %128 = tpu.matmul %122, %1, %cst_57 {dimension_numbers = #tpu.dot_dimension_numbers<[1], [0], [0], [1], [0, 0, 1, 1], [], []>} : vector<8x64xf32>, vector<64x256xf32>, vector<8x256xf32> -> vector<8x256xf32>
    %129 = arith.addf %127, %128 : vector<8x256xf32>
    %130 = vector.extract_strided_slice %129 {offsets = [0, 0], sizes = [8, 64], strides = [1, 1]} : vector<8x256xf32> to vector<8x64xf32>
    %cst_58 = arith.constant 5.000000e-01 : f32
    %131 = vector.broadcast %cst_58 : f32 to vector<8x64xf32>
    %132 = arith.mulf %131, %130 : vector<8x64xf32>
    %133 = math.tanh %132 : vector<8x64xf32>
    %cst_59 = arith.constant 5.000000e-01 : f32
    %134 = vector.broadcast %cst_59 : f32 to vector<8x64xf32>
    %135 = arith.mulf %134, %133 : vector<8x64xf32>
    %cst_60 = arith.constant 5.000000e-01 : f32
    %136 = vector.broadcast %cst_60 : f32 to vector<8x64xf32>
    %137 = arith.addf %135, %136 : vector<8x64xf32>
    %138 = vector.extract_strided_slice %129 {offsets = [0, 64], sizes = [8, 64], strides = [1, 1]} : vector<8x256xf32> to vector<8x64xf32>
    %cst_61 = arith.constant 5.000000e-01 : f32
    %139 = vector.broadcast %cst_61 : f32 to vector<8x64xf32>
    %140 = arith.mulf %139, %138 : vector<8x64xf32>
    %141 = math.tanh %140 : vector<8x64xf32>
    %cst_62 = arith.constant 5.000000e-01 : f32
    %142 = vector.broadcast %cst_62 : f32 to vector<8x64xf32>
    %143 = arith.mulf %142, %141 : vector<8x64xf32>
    %cst_63 = arith.constant 5.000000e-01 : f32
    %144 = vector.broadcast %cst_63 : f32 to vector<8x64xf32>
    %145 = arith.addf %143, %144 : vector<8x64xf32>
    %146 = vector.extract_strided_slice %129 {offsets = [0, 128], sizes = [8, 64], strides = [1, 1]} : vector<8x256xf32> to vector<8x64xf32>
    %147 = math.tanh %146 : vector<8x64xf32>
    %148 = vector.extract_strided_slice %129 {offsets = [0, 192], sizes = [8, 64], strides = [1, 1]} : vector<8x256xf32> to vector<8x64xf32>
    %cst_64 = arith.constant 5.000000e-01 : f32
    %149 = vector.broadcast %cst_64 : f32 to vector<8x64xf32>
    %150 = arith.mulf %149, %148 : vector<8x64xf32>
    %151 = math.tanh %150 : vector<8x64xf32>
    %cst_65 = arith.constant 5.000000e-01 : f32
    %152 = vector.broadcast %cst_65 : f32 to vector<8x64xf32>
    %153 = arith.mulf %152, %151 : vector<8x64xf32>
    %cst_66 = arith.constant 5.000000e-01 : f32
    %154 = vector.broadcast %cst_66 : f32 to vector<8x64xf32>
    %155 = arith.addf %153, %154 : vector<8x64xf32>
    %156 = arith.mulf %145, %120 : vector<8x64xf32>
    %157 = arith.mulf %137, %147 : vector<8x64xf32>
    %158 = arith.addf %156, %157 : vector<8x64xf32>
    %159 = math.tanh %158 : vector<8x64xf32>
    %160 = arith.mulf %155, %159 : vector<8x64xf32>
    %c3 = arith.constant 3 : index
    %c0_67 = arith.constant 0 : index
    %c0_68 = arith.constant 0 : index
    %161 = vector.load %arg2[%c3, %c0_67, %c0_68] : memref<8x8x64xf32, #tpu.memory_space<vmem>>, vector<1x8x64xf32>
    %162 = vector.shape_cast %161 : vector<1x8x64xf32> to vector<8x64xf32>
    %163 = arith.mulf %162, %160 : vector<8x64xf32>
    %164 = arith.addf %126, %163 : vector<8x64xf32>
    %c32_69 = arith.constant 32 : index
    %c0_70 = arith.constant 0 : index
    %165 = vector.load %arg6[%c32_69, %c0_70] : memref<64x256xf32, #tpu.memory_space<vmem>>, vector<8x256xf32>
    %cst_71 = arith.constant dense<0.000000e+00> : vector<8x256xf32>
    %166 = tpu.matmul %160, %1, %cst_71 {dimension_numbers = #tpu.dot_dimension_numbers<[1], [0], [0], [1], [0, 0, 1, 1], [], []>} : vector<8x64xf32>, vector<64x256xf32>, vector<8x256xf32> -> vector<8x256xf32>
    %167 = arith.addf %165, %166 : vector<8x256xf32>
    %168 = vector.extract_strided_slice %167 {offsets = [0, 0], sizes = [8, 64], strides = [1, 1]} : vector<8x256xf32> to vector<8x64xf32>
    %cst_72 = arith.constant 5.000000e-01 : f32
    %169 = vector.broadcast %cst_72 : f32 to vector<8x64xf32>
    %170 = arith.mulf %169, %168 : vector<8x64xf32>
    %171 = math.tanh %170 : vector<8x64xf32>
    %cst_73 = arith.constant 5.000000e-01 : f32
    %172 = vector.broadcast %cst_73 : f32 to vector<8x64xf32>
    %173 = arith.mulf %172, %171 : vector<8x64xf32>
    %cst_74 = arith.constant 5.000000e-01 : f32
    %174 = vector.broadcast %cst_74 : f32 to vector<8x64xf32>
    %175 = arith.addf %173, %174 : vector<8x64xf32>
    %176 = vector.extract_strided_slice %167 {offsets = [0, 64], sizes = [8, 64], strides = [1, 1]} : vector<8x256xf32> to vector<8x64xf32>
    %cst_75 = arith.constant 5.000000e-01 : f32
    %177 = vector.broadcast %cst_75 : f32 to vector<8x64xf32>
    %178 = arith.mulf %177, %176 : vector<8x64xf32>
    %179 = math.tanh %178 : vector<8x64xf32>
    %cst_76 = arith.constant 5.000000e-01 : f32
    %180 = vector.broadcast %cst_76 : f32 to vector<8x64xf32>
    %181 = arith.mulf %180, %179 : vector<8x64xf32>
    %cst_77 = arith.constant 5.000000e-01 : f32
    %182 = vector.broadcast %cst_77 : f32 to vector<8x64xf32>
    %183 = arith.addf %181, %182 : vector<8x64xf32>
    %184 = vector.extract_strided_slice %167 {offsets = [0, 128], sizes = [8, 64], strides = [1, 1]} : vector<8x256xf32> to vector<8x64xf32>
    %185 = math.tanh %184 : vector<8x64xf32>
    %186 = vector.extract_strided_slice %167 {offsets = [0, 192], sizes = [8, 64], strides = [1, 1]} : vector<8x256xf32> to vector<8x64xf32>
    %cst_78 = arith.constant 5.000000e-01 : f32
    %187 = vector.broadcast %cst_78 : f32 to vector<8x64xf32>
    %188 = arith.mulf %187, %186 : vector<8x64xf32>
    %189 = math.tanh %188 : vector<8x64xf32>
    %cst_79 = arith.constant 5.000000e-01 : f32
    %190 = vector.broadcast %cst_79 : f32 to vector<8x64xf32>
    %191 = arith.mulf %190, %189 : vector<8x64xf32>
    %cst_80 = arith.constant 5.000000e-01 : f32
    %192 = vector.broadcast %cst_80 : f32 to vector<8x64xf32>
    %193 = arith.addf %191, %192 : vector<8x64xf32>
    %194 = arith.mulf %183, %158 : vector<8x64xf32>
    %195 = arith.mulf %175, %185 : vector<8x64xf32>
    %196 = arith.addf %194, %195 : vector<8x64xf32>
    %197 = math.tanh %196 : vector<8x64xf32>
    %198 = arith.mulf %193, %197 : vector<8x64xf32>
    %c4 = arith.constant 4 : index
    %c0_81 = arith.constant 0 : index
    %c0_82 = arith.constant 0 : index
    %199 = vector.load %arg2[%c4, %c0_81, %c0_82] : memref<8x8x64xf32, #tpu.memory_space<vmem>>, vector<1x8x64xf32>
    %200 = vector.shape_cast %199 : vector<1x8x64xf32> to vector<8x64xf32>
    %201 = arith.mulf %200, %198 : vector<8x64xf32>
    %202 = arith.addf %164, %201 : vector<8x64xf32>
    %c40 = arith.constant 40 : index
    %c0_83 = arith.constant 0 : index
    %203 = vector.load %arg6[%c40, %c0_83] : memref<64x256xf32, #tpu.memory_space<vmem>>, vector<8x256xf32>
    %cst_84 = arith.constant dense<0.000000e+00> : vector<8x256xf32>
    %204 = tpu.matmul %198, %1, %cst_84 {dimension_numbers = #tpu.dot_dimension_numbers<[1], [0], [0], [1], [0, 0, 1, 1], [], []>} : vector<8x64xf32>, vector<64x256xf32>, vector<8x256xf32> -> vector<8x256xf32>
    %205 = arith.addf %203, %204 : vector<8x256xf32>
    %206 = vector.extract_strided_slice %205 {offsets = [0, 0], sizes = [8, 64], strides = [1, 1]} : vector<8x256xf32> to vector<8x64xf32>
    %cst_85 = arith.constant 5.000000e-01 : f32
    %207 = vector.broadcast %cst_85 : f32 to vector<8x64xf32>
    %208 = arith.mulf %207, %206 : vector<8x64xf32>
    %209 = math.tanh %208 : vector<8x64xf32>
    %cst_86 = arith.constant 5.000000e-01 : f32
    %210 = vector.broadcast %cst_86 : f32 to vector<8x64xf32>
    %211 = arith.mulf %210, %209 : vector<8x64xf32>
    %cst_87 = arith.constant 5.000000e-01 : f32
    %212 = vector.broadcast %cst_87 : f32 to vector<8x64xf32>
    %213 = arith.addf %211, %212 : vector<8x64xf32>
    %214 = vector.extract_strided_slice %205 {offsets = [0, 64], sizes = [8, 64], strides = [1, 1]} : vector<8x256xf32> to vector<8x64xf32>
    %cst_88 = arith.constant 5.000000e-01 : f32
    %215 = vector.broadcast %cst_88 : f32 to vector<8x64xf32>
    %216 = arith.mulf %215, %214 : vector<8x64xf32>
    %217 = math.tanh %216 : vector<8x64xf32>
    %cst_89 = arith.constant 5.000000e-01 : f32
    %218 = vector.broadcast %cst_89 : f32 to vector<8x64xf32>
    %219 = arith.mulf %218, %217 : vector<8x64xf32>
    %cst_90 = arith.constant 5.000000e-01 : f32
    %220 = vector.broadcast %cst_90 : f32 to vector<8x64xf32>
    %221 = arith.addf %219, %220 : vector<8x64xf32>
    %222 = vector.extract_strided_slice %205 {offsets = [0, 128], sizes = [8, 64], strides = [1, 1]} : vector<8x256xf32> to vector<8x64xf32>
    %223 = math.tanh %222 : vector<8x64xf32>
    %224 = vector.extract_strided_slice %205 {offsets = [0, 192], sizes = [8, 64], strides = [1, 1]} : vector<8x256xf32> to vector<8x64xf32>
    %cst_91 = arith.constant 5.000000e-01 : f32
    %225 = vector.broadcast %cst_91 : f32 to vector<8x64xf32>
    %226 = arith.mulf %225, %224 : vector<8x64xf32>
    %227 = math.tanh %226 : vector<8x64xf32>
    %cst_92 = arith.constant 5.000000e-01 : f32
    %228 = vector.broadcast %cst_92 : f32 to vector<8x64xf32>
    %229 = arith.mulf %228, %227 : vector<8x64xf32>
    %cst_93 = arith.constant 5.000000e-01 : f32
    %230 = vector.broadcast %cst_93 : f32 to vector<8x64xf32>
    %231 = arith.addf %229, %230 : vector<8x64xf32>
    %232 = arith.mulf %221, %196 : vector<8x64xf32>
    %233 = arith.mulf %213, %223 : vector<8x64xf32>
    %234 = arith.addf %232, %233 : vector<8x64xf32>
    %235 = math.tanh %234 : vector<8x64xf32>
    %236 = arith.mulf %231, %235 : vector<8x64xf32>
    %c5 = arith.constant 5 : index
    %c0_94 = arith.constant 0 : index
    %c0_95 = arith.constant 0 : index
    %237 = vector.load %arg2[%c5, %c0_94, %c0_95] : memref<8x8x64xf32, #tpu.memory_space<vmem>>, vector<1x8x64xf32>
    %238 = vector.shape_cast %237 : vector<1x8x64xf32> to vector<8x64xf32>
    %239 = arith.mulf %238, %236 : vector<8x64xf32>
    %240 = arith.addf %202, %239 : vector<8x64xf32>
    %c48 = arith.constant 48 : index
    %c0_96 = arith.constant 0 : index
    %241 = vector.load %arg6[%c48, %c0_96] : memref<64x256xf32, #tpu.memory_space<vmem>>, vector<8x256xf32>
    %cst_97 = arith.constant dense<0.000000e+00> : vector<8x256xf32>
    %242 = tpu.matmul %236, %1, %cst_97 {dimension_numbers = #tpu.dot_dimension_numbers<[1], [0], [0], [1], [0, 0, 1, 1], [], []>} : vector<8x64xf32>, vector<64x256xf32>, vector<8x256xf32> -> vector<8x256xf32>
    %243 = arith.addf %241, %242 : vector<8x256xf32>
    %244 = vector.extract_strided_slice %243 {offsets = [0, 0], sizes = [8, 64], strides = [1, 1]} : vector<8x256xf32> to vector<8x64xf32>
    %cst_98 = arith.constant 5.000000e-01 : f32
    %245 = vector.broadcast %cst_98 : f32 to vector<8x64xf32>
    %246 = arith.mulf %245, %244 : vector<8x64xf32>
    %247 = math.tanh %246 : vector<8x64xf32>
    %cst_99 = arith.constant 5.000000e-01 : f32
    %248 = vector.broadcast %cst_99 : f32 to vector<8x64xf32>
    %249 = arith.mulf %248, %247 : vector<8x64xf32>
    %cst_100 = arith.constant 5.000000e-01 : f32
    %250 = vector.broadcast %cst_100 : f32 to vector<8x64xf32>
    %251 = arith.addf %249, %250 : vector<8x64xf32>
    %252 = vector.extract_strided_slice %243 {offsets = [0, 64], sizes = [8, 64], strides = [1, 1]} : vector<8x256xf32> to vector<8x64xf32>
    %cst_101 = arith.constant 5.000000e-01 : f32
    %253 = vector.broadcast %cst_101 : f32 to vector<8x64xf32>
    %254 = arith.mulf %253, %252 : vector<8x64xf32>
    %255 = math.tanh %254 : vector<8x64xf32>
    %cst_102 = arith.constant 5.000000e-01 : f32
    %256 = vector.broadcast %cst_102 : f32 to vector<8x64xf32>
    %257 = arith.mulf %256, %255 : vector<8x64xf32>
    %cst_103 = arith.constant 5.000000e-01 : f32
    %258 = vector.broadcast %cst_103 : f32 to vector<8x64xf32>
    %259 = arith.addf %257, %258 : vector<8x64xf32>
    %260 = vector.extract_strided_slice %243 {offsets = [0, 128], sizes = [8, 64], strides = [1, 1]} : vector<8x256xf32> to vector<8x64xf32>
    %261 = math.tanh %260 : vector<8x64xf32>
    %262 = vector.extract_strided_slice %243 {offsets = [0, 192], sizes = [8, 64], strides = [1, 1]} : vector<8x256xf32> to vector<8x64xf32>
    %cst_104 = arith.constant 5.000000e-01 : f32
    %263 = vector.broadcast %cst_104 : f32 to vector<8x64xf32>
    %264 = arith.mulf %263, %262 : vector<8x64xf32>
    %265 = math.tanh %264 : vector<8x64xf32>
    %cst_105 = arith.constant 5.000000e-01 : f32
    %266 = vector.broadcast %cst_105 : f32 to vector<8x64xf32>
    %267 = arith.mulf %266, %265 : vector<8x64xf32>
    %cst_106 = arith.constant 5.000000e-01 : f32
    %268 = vector.broadcast %cst_106 : f32 to vector<8x64xf32>
    %269 = arith.addf %267, %268 : vector<8x64xf32>
    %270 = arith.mulf %259, %234 : vector<8x64xf32>
    %271 = arith.mulf %251, %261 : vector<8x64xf32>
    %272 = arith.addf %270, %271 : vector<8x64xf32>
    %273 = math.tanh %272 : vector<8x64xf32>
    %274 = arith.mulf %269, %273 : vector<8x64xf32>
    %c6 = arith.constant 6 : index
    %c0_107 = arith.constant 0 : index
    %c0_108 = arith.constant 0 : index
    %275 = vector.load %arg2[%c6, %c0_107, %c0_108] : memref<8x8x64xf32, #tpu.memory_space<vmem>>, vector<1x8x64xf32>
    %276 = vector.shape_cast %275 : vector<1x8x64xf32> to vector<8x64xf32>
    %277 = arith.mulf %276, %274 : vector<8x64xf32>
    %278 = arith.addf %240, %277 : vector<8x64xf32>
    %c56 = arith.constant 56 : index
    %c0_109 = arith.constant 0 : index
    %279 = vector.load %arg6[%c56, %c0_109] : memref<64x256xf32, #tpu.memory_space<vmem>>, vector<8x256xf32>
    %cst_110 = arith.constant dense<0.000000e+00> : vector<8x256xf32>
    %280 = tpu.matmul %274, %1, %cst_110 {dimension_numbers = #tpu.dot_dimension_numbers<[1], [0], [0], [1], [0, 0, 1, 1], [], []>} : vector<8x64xf32>, vector<64x256xf32>, vector<8x256xf32> -> vector<8x256xf32>
    %281 = arith.addf %279, %280 : vector<8x256xf32>
    %282 = vector.extract_strided_slice %281 {offsets = [0, 0], sizes = [8, 64], strides = [1, 1]} : vector<8x256xf32> to vector<8x64xf32>
    %cst_111 = arith.constant 5.000000e-01 : f32
    %283 = vector.broadcast %cst_111 : f32 to vector<8x64xf32>
    %284 = arith.mulf %283, %282 : vector<8x64xf32>
    %285 = math.tanh %284 : vector<8x64xf32>
    %cst_112 = arith.constant 5.000000e-01 : f32
    %286 = vector.broadcast %cst_112 : f32 to vector<8x64xf32>
    %287 = arith.mulf %286, %285 : vector<8x64xf32>
    %cst_113 = arith.constant 5.000000e-01 : f32
    %288 = vector.broadcast %cst_113 : f32 to vector<8x64xf32>
    %289 = arith.addf %287, %288 : vector<8x64xf32>
    %290 = vector.extract_strided_slice %281 {offsets = [0, 64], sizes = [8, 64], strides = [1, 1]} : vector<8x256xf32> to vector<8x64xf32>
    %cst_114 = arith.constant 5.000000e-01 : f32
    %291 = vector.broadcast %cst_114 : f32 to vector<8x64xf32>
    %292 = arith.mulf %291, %290 : vector<8x64xf32>
    %293 = math.tanh %292 : vector<8x64xf32>
    %cst_115 = arith.constant 5.000000e-01 : f32
    %294 = vector.broadcast %cst_115 : f32 to vector<8x64xf32>
    %295 = arith.mulf %294, %293 : vector<8x64xf32>
    %cst_116 = arith.constant 5.000000e-01 : f32
    %296 = vector.broadcast %cst_116 : f32 to vector<8x64xf32>
    %297 = arith.addf %295, %296 : vector<8x64xf32>
    %298 = vector.extract_strided_slice %281 {offsets = [0, 128], sizes = [8, 64], strides = [1, 1]} : vector<8x256xf32> to vector<8x64xf32>
    %299 = math.tanh %298 : vector<8x64xf32>
    %300 = vector.extract_strided_slice %281 {offsets = [0, 192], sizes = [8, 64], strides = [1, 1]} : vector<8x256xf32> to vector<8x64xf32>
    %cst_117 = arith.constant 5.000000e-01 : f32
    %301 = vector.broadcast %cst_117 : f32 to vector<8x64xf32>
    %302 = arith.mulf %301, %300 : vector<8x64xf32>
    %303 = math.tanh %302 : vector<8x64xf32>
    %cst_118 = arith.constant 5.000000e-01 : f32
    %304 = vector.broadcast %cst_118 : f32 to vector<8x64xf32>
    %305 = arith.mulf %304, %303 : vector<8x64xf32>
    %cst_119 = arith.constant 5.000000e-01 : f32
    %306 = vector.broadcast %cst_119 : f32 to vector<8x64xf32>
    %307 = arith.addf %305, %306 : vector<8x64xf32>
    %308 = arith.mulf %297, %272 : vector<8x64xf32>
    %309 = arith.mulf %289, %299 : vector<8x64xf32>
    %310 = arith.addf %308, %309 : vector<8x64xf32>
    %311 = math.tanh %310 : vector<8x64xf32>
    %312 = arith.mulf %307, %311 : vector<8x64xf32>
    %c7 = arith.constant 7 : index
    %c0_120 = arith.constant 0 : index
    %c0_121 = arith.constant 0 : index
    %313 = vector.load %arg2[%c7, %c0_120, %c0_121] : memref<8x8x64xf32, #tpu.memory_space<vmem>>, vector<1x8x64xf32>
    %314 = vector.shape_cast %313 : vector<1x8x64xf32> to vector<8x64xf32>
    %315 = arith.mulf %314, %312 : vector<8x64xf32>
    %316 = arith.addf %278, %315 : vector<8x64xf32>
    %317 = vector.broadcast %3 : vector<1x64xf32> to vector<8x64xf32>
    %318 = arith.mulf %316, %317 : vector<8x64xf32>
    %cst_122 = arith.constant dense<0.000000e+00> : vector<8xf32>
    %319 = vector.multi_reduction <add>, %318, %cst_122 [1] : vector<8x64xf32> to vector<8xf32>
    %320 = vector.shape_cast %319 : vector<8xf32> to vector<8x1xf32>
    %321 = vector.broadcast %4 : vector<1x1xf32> to vector<8x1xf32>
    %322 = arith.addf %320, %321 : vector<8x1xf32>
    %c0_123 = arith.constant 0 : index
    %c0_124 = arith.constant 0 : index
    %323 = vector.load %arg5[%c0_123, %c0_124] : memref<8x1xf32, #tpu.memory_space<vmem>>, vector<8x1xf32>
    tpu.vector_store %arg5[%c0_123, %c0_124], %322 {strides = array<i32>} : memref<8x1xf32, #tpu.memory_space<vmem>>, vector<8x1xf32>,
    return
  }
  func.func @transform_0(%arg0: i32) -> (i32, i32) {
    %c0_i32 = arith.constant 0 : i32
    %c0_i32_0 = arith.constant 0 : i32
    return %arg0, %c0_i32 : i32, i32
  }
  func.func @transform_1(%arg0: i32) -> (i32, i32, i32) {
    %c0_i32 = arith.constant 0 : i32
    %c0_i32_0 = arith.constant 0 : i32
    %c0_i32_1 = arith.constant 0 : i32
    return %c0_i32, %arg0, %c0_i32_0 : i32, i32, i32
  }
  func.func @transform_2(%arg0: i32) -> (i32, i32) {
    %c0_i32 = arith.constant 0 : i32
    %c0_i32_0 = arith.constant 0 : i32
    %c0_i32_1 = arith.constant 0 : i32
    return %c0_i32, %c0_i32_0 : i32, i32
  }
  func.func @transform_3(%arg0: i32) -> (i32, i32) {
    %c0_i32 = arith.constant 0 : i32
    %c0_i32_0 = arith.constant 0 : i32
    %c0_i32_1 = arith.constant 0 : i32
    return %c0_i32, %c0_i32_0 : i32, i32
  }
  func.func @transform_4(%arg0: i32) -> (i32, i32) {
    %c0_i32 = arith.constant 0 : i32
    %c0_i32_0 = arith.constant 0 : i32
    return %arg0, %c0_i32 : i32, i32
  }
}

</mosaic_0001>

<bundles_post_ra>
// kernel: tpu_custom_call.1
= control target key start
LH: loop header
LB: loop body
LE: loop exit
PB: predicated region body
PF: predicated region fallthrough
CT: control target
= control target key end

     0   :  { %9 = vsyncpa [#allocation4], 0  ;;  %s917_s18 = smov [#allocation3]   ;;  %s918_s20 = smov 256   ;;  %s1279_s0 = inlined_call_operand.vmem [shape: f32[64,32], index: 0, kind: input, shape index: {}]   ;;  %s1280_s1 = inlined_call_operand.vmem [shape: f32[8,8,64], index: 1, kind: input, shape index: {}]   ;;  %s1281_s2 = inlined_call_operand.hbm [shape: f32[96,256], index: 2, kind: input, shape index: {}]   ;;  %s1282_s3 = inlined_call_operand.vmem [shape: f32[8,256], index: 3, kind: input, shape index: {}]   ;;  %s1283_s4 = inlined_call_operand.vmem [shape: f32[8,1], index: 4, kind: output, shape index: {}]  }
   0x1   :  { %s18_s17 = sshll.u32 %s1281_s2, 4  ;;  %s20_s19 = sshll.u32 %s917_s18, 4  ;;  %s19_s17 = int_to_ptr.hbm [resolvable:$true] %s18_s17  ;;  %s21_s19 = int_to_ptr.vmem [resolvable:$true] %s20_s19 }
   0x2   :  { %s919_s21 = smov 16  }
   0x3   :  { %26 = dma.hbm_to_vmem [thread:$0]  %s19_s17, 3072, %s21_s19, [#allocation4], %s918_s20, %s918_s20, %s919_s21  }
   0x4   :  { %915 = dma.done.wait [#allocation4], 3072  }
   0x5   :  { %916 = vsyncadd [#allocation4], 4294964224  ;;  %v950_v0 = vld [vmem:[#allocation3 + $0xb0] sm:$0xff]  ;;  %v952_v1 = vld [vmem:[#allocation3 + $0xa0] sm:$0xff]  ;;  %vm73_vm0 = vcmask 261120   ;;  %v920_v25 = vmov 0.0  }
   0x6   :  { %210 = vmatpush.msra.mxu2 %v950_v0  ;;  %v955_v2 = vld [vmem:[#allocation3 + $0xb8] sm:$0xff]  ;;  %v957_v3 = vld [vmem:[#allocation3 + $0x90] sm:$0xff]  ;;  %v960_v4 = vld [vmem:[#allocation3 + $0xa8] sm:$0xff]  ;;  %s921_s25 = smov 64   ;;  %vm198_vm1 = vcmask 523264   ;;  %vm778_vm2 = vcmask 7168  }
   0x7   :  { %230 = vmatpush.msra.mxu3 %v955_v2  ;;  %v963_v5 = vld [vmem:[#allocation3 + $0x98] sm:$0xff]  ;;  %v39_v6 = vld [vmem:[#allocation3 + $0x30] sm:$0xff]  ;;  %v965_v7 = vld [vmem:[#allocation3 + $0x80] sm:$0xff] }
   0x8   :  { %211 = vmatpush.msra.mxu2 %v952_v1  ;;  %110 = vmatpush.msra.mxu0 %v39_v6  ;;  %v37_v8 = vld [vmem:[#allocation3 + $0x20] sm:$0xff]  ;;  %v969_v9 = vld [vmem:[#allocation3 + $0x88] sm:$0xff]  ;;  %v35_v10 = vld [vmem:[#allocation3 + $0x10] sm:$0xff] }
   0x9   :  { %231 = vmatpush.msra.mxu3 %v960_v4  ;;  %v971_v11 = vld [vmem:[#allocation3 + $0x70] sm:$0xff]  ;;  %v40_v12 = vld [vmem:[#allocation3 + $0x38] sm:$0xff]  ;;  %v33_v14 = vld [vmem:[#allocation3] sm:$0xff] }
   0xa   :  { %212 = vmatpush.msra.mxu2 %v957_v3  ;;  %111 = vmatpush.msra.mxu0 %v37_v8  ;;  %v975_v13 = vld [vmem:[#allocation3 + $0x78] sm:$0xff]  ;;  %v38_v15 = vld [vmem:[#allocation3 + $0x28] sm:$0xff]  ;;  %v977_v16 = vld [vmem:[#allocation3 + $0x60] sm:$0xff] }
   0xb   :  { %232 = vmatpush.msra.mxu3 %v963_v5  ;;  %151 = vmatpush.msra.mxu1 %v40_v12  ;;  %v60_v17 = vld [vmem:[%s1279_s0] sm:$0xff]  ;;  %v984_v18 = vld [vmem:[#allocation3 + $0x68] sm:$0xff]  ;;  %v36_v19 = vld [vmem:[#allocation3 + $0x18] sm:$0xff] }
   0xc   :  { %213 = vmatpush.msra.mxu2 %v965_v7  ;;  %112 = vmatpush.msra.mxu0 %v35_v10  ;;  %v986_v20 = vld [vmem:[#allocation3 + $0x50] sm:$0xff]  ;;  %v990_v21 = vld [vmem:[#allocation3 + $0x58] sm:$0xff]  ;;  %v34_v22 = vld [vmem:[#allocation3 + $0x8] sm:$0xff] }
   0xd   :  { %233 = vmatpush.msra.mxu3 %v969_v9  ;;  %152 = vmatpush.msra.mxu1 %v38_v15  ;;  %v993_v23 = vld [vmem:[#allocation3 + $0x40] sm:$0xff]  ;;  %v997_v24 = vld [vmem:[#allocation3 + $0x48] sm:$0xff] }
   0xe   :  { %214 = vmatpush.msra.mxu2 %v971_v11  ;;  %113 = vmatpush.msra.mxu0 %v33_v14  ;;  %v57_v26 = vld [vmem:[%s1282_s3] ss:$8 sm:$0x3] }
   0xf   :  { %234 = vmatpush.msra.mxu3 %v975_v13  ;;  %785 = vmatmul.msk.f32.vlgmr.msra.gmra.mxu0 %vm73_vm0, %v60_v17  ;;  %v1070_v27 = vperm.slane %v57_v26, 0  ;;  %v1072_v29 = vperm.slane %v57_v26, 1  ;;  %v61_v52 = vld [vmem:[%s1279_s0 + $0x8] sm:$0xff] }
  0x10   :  { %215 = vmatpush.msra.mxu2 %v977_v16  ;;  %153 = vmatpush.msra.mxu1 %v36_v19 }
  0x11   :  { %235 = vmatpush.msra.mxu3 %v984_v18  ;;  %497 = vmatpush.msrb.mxu0 %v950_v0 }
  0x12   :  { %216 = vmatpush.msra.mxu2 %v986_v20  ;;  %154 = vmatpush.msra.mxu1 %v34_v22 }
  0x13   :  { %236 = vmatpush.msra.mxu3 %v990_v21  ;;  %793 = vmatmul.msk.f32.vlgmr.msra.gmra.mxu1 %vm73_vm0, %v60_v17 }
  0x14   :  { %217 = vmatpush.msra.mxu2 %v993_v23  ;;  %517 = vmatpush.msrb.mxu1 %v955_v2 }
  0x15   :  { %218 = vmatmul.f32.vlgmr.msra.gmra.mxu2 %v920_v25  ;;  %237 = vmatpush.msra.mxu3 %v997_v24 }
  0x16   :  { %238 = vmatmul.f32.vlgmr.msra.gmra.mxu3 %v920_v25  ;;  %281 = vmatpush.msrb.mxu2 %v950_v0 }
  0x17   :  { %301 = vmatpush.msrb.mxu3 %v955_v2  ;;  %498 = vmatpush.msrb.mxu0 %v952_v1 }
  0x18   :  { %282 = vmatpush.msrb.mxu2 %v952_v1  ;;  %518 = vmatpush.msrb.mxu1 %v960_v4 }
  0x19   :  { %302 = vmatpush.msrb.mxu3 %v960_v4  ;;  %499 = vmatpush.msrb.mxu0 %v957_v3 }
  0x1a   :  { %283 = vmatpush.msrb.mxu2 %v957_v3  ;;  %519 = vmatpush.msrb.mxu1 %v963_v5 }
  0x1b   :  { %303 = vmatpush.msrb.mxu3 %v963_v5  ;;  %500 = vmatpush.msrb.mxu0 %v965_v7 }
  0x1c   :  { %284 = vmatpush.msrb.mxu2 %v965_v7  ;;  %520 = vmatpush.msrb.mxu1 %v969_v9 }
  0x1d   :  { %304 = vmatpush.msrb.mxu3 %v969_v9  ;;  %501 = vmatpush.msrb.mxu0 %v971_v11 }
  0x1e   :  { %285 = vmatpush.msrb.mxu2 %v971_v11  ;;  %521 = vmatpush.msrb.mxu1 %v975_v13 }
  0x1f   :  { %305 = vmatpush.msrb.mxu3 %v975_v13  ;;  %502 = vmatpush.msrb.mxu0 %v977_v16 }
  0x20   :  { %286 = vmatpush.msrb.mxu2 %v977_v16  ;;  %522 = vmatpush.msrb.mxu1 %v984_v18 }
  0x21   :  { %306 = vmatpush.msrb.mxu3 %v984_v18  ;;  %503 = vmatpush.msrb.mxu0 %v986_v20 }
  0x22   :  { %287 = vmatpush.msrb.mxu2 %v986_v20  ;;  %523 = vmatpush.msrb.mxu1 %v990_v21 }
  0x23   :  { %307 = vmatpush.msrb.mxu3 %v990_v21  ;;  %504 = vmatpush.msrb.mxu0 %v993_v23 }
  0x24   :  { %288 = vmatpush.msrb.mxu2 %v993_v23  ;;  %524 = vmatpush.msrb.mxu1 %v997_v24 }
  0x25   :  { %308 = vmatpush.msrb.mxu3 %v997_v24  ;;  %641 = vmatpush.msra.mxu0 %v950_v0 }
  0x26   :  { %353 = vmatpush.msra.mxu2 %v950_v0  ;;  %661 = vmatpush.msra.mxu1 %v955_v2 }
  0x27   :  { %373 = vmatpush.msra.mxu3 %v955_v2  ;;  %642 = vmatpush.msra.mxu0 %v952_v1 }
  0x28   :  { %354 = vmatpush.msra.mxu2 %v952_v1  ;;  %662 = vmatpush.msra.mxu1 %v960_v4 }
  0x29   :  { %374 = vmatpush.msra.mxu3 %v960_v4  ;;  %643 = vmatpush.msra.mxu0 %v957_v3 }
  0x2a   :  { %355 = vmatpush.msra.mxu2 %v957_v3  ;;  %663 = vmatpush.msra.mxu1 %v963_v5 }
  0x2b   :  { %375 = vmatpush.msra.mxu3 %v963_v5  ;;  %644 = vmatpush.msra.mxu0 %v965_v7 }
  0x2c   :  { %356 = vmatpush.msra.mxu2 %v965_v7  ;;  %664 = vmatpush.msra.mxu1 %v969_v9 }
  0x2d   :  { %376 = vmatpush.msra.mxu3 %v969_v9  ;;  %645 = vmatpush.msra.mxu0 %v971_v11 }
  0x2e   :  { %357 = vmatpush.msra.mxu2 %v971_v11  ;;  %665 = vmatpush.msra.mxu1 %v975_v13 }
  0x2f   :  { %377 = vmatpush.msra.mxu3 %v975_v13  ;;  %646 = vmatpush.msra.mxu0 %v977_v16 }
  0x30   :  { %358 = vmatpush.msra.mxu2 %v977_v16  ;;  %666 = vmatpush.msra.mxu1 %v984_v18 }
  0x31   :  { %378 = vmatpush.msra.mxu3 %v984_v18  ;;  %647 = vmatpush.msra.mxu0 %v986_v20 }
  0x32   :  { %359 = vmatpush.msra.mxu2 %v986_v20  ;;  %667 = vmatpush.msra.mxu1 %v990_v21 }
  0x33   :  { %379 = vmatpush.msra.mxu3 %v990_v21  ;;  %648 = vmatpush.msra.mxu0 %v993_v23 }
  0x34   :  { %360 = vmatpush.msra.mxu2 %v993_v23  ;;  %668 = vmatpush.msra.mxu1 %v997_v24 }
  0x35   :  { %380 = vmatpush.msra.mxu3 %v997_v24  ;;  %786 = vmatmul.msk.f32.gmra.mxu0 %vm73_vm0, %v61_v52 }
  0x36   :  { %794 = vmatmul.msk.f32.gmra.mxu1 %vm73_vm0, %v61_v52 }
  0x8c   :  { %v115_v28 = vpop.f32.mrf.mxu0 }
  0x8d   :  { %v116_v31 = vadd.f32 %v115_v28, %v1070_v27 }
  0x90   :  { %v156_v30 = vpop.f32.mrf.mxu1 }
  0x91   :  { %v157_v32 = vadd.f32 %v156_v30, %v1072_v29 }
  0x98   :  { %v219_v33 = vpop.f32.mrf.mxu2 }
  0x99   :  { %v242_v34 = vadd.f32 %v219_v33, %v116_v31  ;;  %v239_v35 = vpop.f32.mrf.mxu3  ;;  %v62_v31 = vld [vmem:[%s1279_s0 + $0x10] sm:$0xff] }
  0x9a   :  { %v243_v37 = vadd.f32 %v239_v35, %v157_v32  ;;  %787 = vmatmul.msk.f32.gmra.mxu0 %vm73_vm0, %v62_v31  ;;  %795 = vmatmul.msk.f32.gmra.mxu1 %vm73_vm0, %v62_v31 }
  0x9b   :  { %v244_v36 = vmul.f32 0.5, %v242_v34 }
  0x9c   :  { %v249_v43 = vmul.f32 0.5, %v243_v37 }
  0x9d   :  { %827 = vtanh.f32 %v244_v36 }
  0x9e   :  { %829 = vtanh.f32 %v243_v37 }
  0x9f   :  { %831 = vtanh.f32 %v249_v43 }
  0xa3   :  { %v828_v38 = vpop.eup %827 }
  0xa4   :  { %v246_v39 = vmul.f32 0.5, %v828_v38  ;;  %v830_v40 = vpop.eup %829 }
  0xa5   :  { %v832_v46 = vpop.eup %831 }
  0xa6   :  { %v247_v41 = vadd.f32 0.5, %v246_v39  ;;  %v251_v48 = vmul.f32 0.5, %v832_v46 }
  0xa8   :  { %v254_v42 = vmul.f32 %v830_v40, %v247_v41  ;;  %v253_v44 = vmul.f32 0.0, %v247_v41  ;;  %v252_v49 = vadd.f32 0.5, %v251_v48 }
  0xaa   :  { %256 = vrot.lane.b32.xlu0 %v254_v42, %s921_s25 }
  0xb2   :  { %v118_v54 = vpop.f32.mrf.mxu0 }
  0xb3   :  { %v119_v55 = vadd.f32 %v118_v54, %v1070_v27  ;;  %v159_v56 = vpop.f32.mrf.mxu1 }
  0xb4   :  { %v160_v58 = vadd.f32 %v159_v56, %v1072_v29 }
 0x117   :  { %v121_v33 = vpop.f32.mrf.mxu0  ;;  %v162_v35 = vpop.f32.mrf.mxu1 }
 0x118   :  { %v122_v34 = vadd.f32 %v121_v33, %v1070_v27  ;;  %v163_v37 = vadd.f32 %v162_v35, %v1072_v29 }
 0x11c   :  { %v257_v45 = vpop.permute.xlu0 %256 }
 0x11d   :  { %v259_v47 = vadd.f32 %v257_v45, %v253_v44 }
 0x11f   :  { %833 = vtanh.f32 %v259_v47 }
 0x125   :  { %v834_v50 = vpop.eup %833 }
 0x126   :  { %v261_v51 = vmul.f32 %v834_v50, %v252_v49 }
 0x128   :  { %264 = vrot.lane.b32.xlu0 %v261_v51, %s921_s25 }
 0x19a   :  { %v1083_v53 = vpop.permute.xlu0 %264 }
 0x19b   :  { %801 = vmatmul.msk.f32.vlgmr.msrb.gmra.mxu2 %vm198_vm1, %v1083_v53  ;;  %802 = vmatmul.msk.f32.vlgmr.msrb.gmra.mxu3 %vm198_vm1, %v1083_v53 }
 0x19c   :  { %425 = vmatpush.msrb.mxu2 %v950_v0  ;;  %445 = vmatpush.msrb.mxu3 %v955_v2 }
 0x19e   :  { %426 = vmatpush.msrb.mxu2 %v952_v1  ;;  %446 = vmatpush.msrb.mxu3 %v960_v4 }
 0x1a0   :  { %427 = vmatpush.msrb.mxu2 %v957_v3  ;;  %447 = vmatpush.msrb.mxu3 %v963_v5 }
 0x1a2   :  { %428 = vmatpush.msrb.mxu2 %v965_v7  ;;  %448 = vmatpush.msrb.mxu3 %v969_v9 }
 0x1a4   :  { %429 = vmatpush.msrb.mxu2 %v971_v11  ;;  %449 = vmatpush.msrb.mxu3 %v975_v13 }
 0x1a6   :  { %430 = vmatpush.msrb.mxu2 %v977_v16  ;;  %450 = vmatpush.msrb.mxu3 %v984_v18 }
 0x1a8   :  { %431 = vmatpush.msrb.mxu2 %v986_v20  ;;  %451 = vmatpush.msrb.mxu3 %v990_v21 }
 0x1aa   :  { %432 = vmatpush.msrb.mxu2 %v993_v23  ;;  %452 = vmatpush.msrb.mxu3 %v997_v24 }
 0x21e   :  { %v290_v57 = vpop.f32.mrf.mxu2  ;;  %v310_v60 = vpop.f32.mrf.mxu3 }
 0x21f   :  { %v313_v59 = vadd.f32 %v290_v57, %v119_v55  ;;  %v314_v62 = vadd.f32 %v310_v60, %v160_v58  ;;  %v63_v57 = vld [vmem:[%s1279_s0 + $0x18] sm:$0xff]  ;;  %v66_v60 = vld [vmem:[%s1279_s0 + $0x30] sm:$0xff] }
 0x220   :  { %788 = vmatmul.msk.f32.gmra.mxu0 %vm73_vm0, %v63_v57  ;;  %796 = vmatmul.msk.f32.gmra.mxu1 %vm73_vm0, %v63_v57 }
 0x221   :  { %v315_v61 = vmul.f32 0.5, %v313_v59  ;;  %v320_v14 = vmul.f32 0.5, %v314_v62 }
 0x223   :  { %835 = vtanh.f32 %v315_v61 }
 0x224   :  { %837 = vtanh.f32 %v314_v62 }
 0x225   :  { %839 = vtanh.f32 %v320_v14 }
 0x229   :  { %v836_v63 = vpop.eup %835 }
 0x22a   :  { %v317_v6 = vmul.f32 0.5, %v836_v63  ;;  %v838_v10 = vpop.eup %837 }
 0x22b   :  { %v840_v19 = vpop.eup %839 }
 0x22c   :  { %v318_v8 = vadd.f32 0.5, %v317_v6  ;;  %v322_v25 = vmul.f32 0.5, %v840_v19 }
 0x22e   :  { %v325_v12 = vmul.f32 %v838_v10, %v318_v8  ;;  %v324_v15 = vmul.f32 %v318_v8, %v259_v47  ;;  %v323_v26 = vadd.f32 0.5, %v322_v25  ;;  %v67_v8 = vld [vmem:[%s1279_s0 + $0x38] sm:$0xff] }
 0x230   :  { %327 = vrot.lane.b32.xlu1 %v325_v12, %s921_s25 }
 0x2a2   :  { %v328_v17 = vpop.permute.xlu1 %327 }
 0x2a3   :  { %v330_v22 = vadd.f32 %v328_v17, %v324_v15 }
 0x2a5   :  { %841 = vtanh.f32 %v330_v22 }
 0x2ab   :  { %v842_v28 = vpop.eup %841 }
 0x2ac   :  { %v332_v30 = vmul.f32 %v842_v28, %v323_v26 }
 0x2ae   :  { %336 = vrot.lane.b32.xlu1 %v332_v30, %s921_s25 }
 0x320   :  { %v1114_v32 = vpop.permute.xlu1 %336 }
 0x321   :  { %804 = vmatmul.msk.f32.vlgmr.msra.gmra.mxu2 %vm198_vm1, %v1114_v32  ;;  %805 = vmatmul.msk.f32.vlgmr.msra.gmra.mxu3 %vm198_vm1, %v1114_v32 }
 0x322   :  { %569 = vmatpush.msra.mxu2 %v950_v0  ;;  %589 = vmatpush.msra.mxu3 %v955_v2 }
 0x324   :  { %570 = vmatpush.msra.mxu2 %v952_v1  ;;  %590 = vmatpush.msra.mxu3 %v960_v4 }
 0x326   :  { %571 = vmatpush.msra.mxu2 %v957_v3  ;;  %591 = vmatpush.msra.mxu3 %v963_v5 }
 0x328   :  { %572 = vmatpush.msra.mxu2 %v965_v7  ;;  %592 = vmatpush.msra.mxu3 %v969_v9 }
 0x32a   :  { %573 = vmatpush.msra.mxu2 %v971_v11  ;;  %593 = vmatpush.msra.mxu3 %v975_v13 }
 0x32c   :  { %574 = vmatpush.msra.mxu2 %v977_v16  ;;  %594 = vmatpush.msra.mxu3 %v984_v18 }
 0x32e   :  { %575 = vmatpush.msra.mxu2 %v986_v20  ;;  %595 = vmatpush.msra.mxu3 %v990_v21 }
 0x330   :  { %576 = vmatpush.msra.mxu2 %v993_v23  ;;  %596 = vmatpush.msra.mxu3 %v997_v24 }
 0x3a4   :  { %v362_v36 = vpop.f32.mrf.mxu2  ;;  %v382_v39 = vpop.f32.mrf.mxu3 }
 0x3a5   :  { %v385_v38 = vadd.f32 %v362_v36, %v122_v34  ;;  %v386_v41 = vadd.f32 %v382_v39, %v163_v37 }
 0x3a7   :  { %v387_v40 = vmul.f32 0.5, %v385_v38  ;;  %v392_v47 = vmul.f32 0.5, %v386_v41 }
 0x3a9   :  { %843 = vtanh.f32 %v387_v40 }
 0x3aa   :  { %845 = vtanh.f32 %v386_v41 }
 0x3ab   :  { %847 = vtanh.f32 %v392_v47 }
 0x3af   :  { %v844_v42 = vpop.eup %843 }
 0x3b0   :  { %v389_v43 = vmul.f32 0.5, %v844_v42  ;;  %v846_v45 = vpop.eup %845 }
 0x3b1   :  { %v848_v50 = vpop.eup %847 }
 0x3b2   :  { %v390_v44 = vadd.f32 0.5, %v389_v43  ;;  %v394_v52 = vmul.f32 0.5, %v848_v50 }
 0x3b4   :  { %v397_v46 = vmul.f32 %v846_v45, %v390_v44  ;;  %v396_v48 = vmul.f32 %v390_v44, %v330_v22  ;;  %v395_v54 = vadd.f32 0.5, %v394_v52 }
 0x3b6   :  { %399 = vrot.lane.b32.xlu2 %v397_v46, %s921_s25 }
 0x410   :  { %v400_v49 = vpop.permute.xlu2 %399 }
 0x411   :  { %v402_v51 = vadd.f32 %v400_v49, %v396_v48 }
 0x413   :  { %849 = vtanh.f32 %v402_v51 }
 0x419   :  { %v850_v55 = vpop.eup %849 }
 0x41a   :  { %v404_v56 = vmul.f32 %v850_v55, %v395_v54 }
 0x41c   :  { %408 = vrot.lane.b32.xlu2 %v404_v56, %s921_s25 }
 0x476   :  { %v1145_v58 = vpop.permute.xlu2 %408 }
 0x477   :  { %807 = vmatmul.msk.f32.vlgmr.msrb.gmra.mxu2 %vm198_vm1, %v1145_v58  ;;  %808 = vmatmul.msk.f32.vlgmr.msrb.gmra.mxu3 %vm198_vm1, %v1145_v58 }
 0x478   :  { %713 = vmatpush.msrb.mxu2 %v950_v0  ;;  %733 = vmatpush.msrb.mxu3 %v955_v2  ;;  %v124_v0 = vpop.f32.mrf.mxu0  ;;  %v165_v2 = vpop.f32.mrf.mxu1 }
 0x47a   :  { %714 = vmatpush.msrb.mxu2 %v952_v1  ;;  %734 = vmatpush.msrb.mxu3 %v960_v4  ;;  %v125_v1 = vadd.f32 %v124_v0, %v1070_v27  ;;  %v166_v4 = vadd.f32 %v165_v2, %v1072_v29 }
 0x47c   :  { %715 = vmatpush.msrb.mxu2 %v957_v3  ;;  %735 = vmatpush.msrb.mxu3 %v963_v5 }
 0x47e   :  { %716 = vmatpush.msrb.mxu2 %v965_v7  ;;  %736 = vmatpush.msrb.mxu3 %v969_v9 }
 0x480   :  { %717 = vmatpush.msrb.mxu2 %v971_v11  ;;  %737 = vmatpush.msrb.mxu3 %v975_v13 }
 0x482   :  { %718 = vmatpush.msrb.mxu2 %v977_v16  ;;  %738 = vmatpush.msrb.mxu3 %v984_v18 }
 0x484   :  { %719 = vmatpush.msrb.mxu2 %v986_v20  ;;  %739 = vmatpush.msrb.mxu3 %v990_v21 }
 0x486   :  { %720 = vmatpush.msrb.mxu2 %v993_v23  ;;  %740 = vmatpush.msrb.mxu3 %v997_v24  ;;  %v64_v23 = vld [vmem:[%s1279_s0 + $0x20] sm:$0xff]  ;;  %v65_v24 = vld [vmem:[%s1279_s0 + $0x28] sm:$0xff] }
 0x487   :  { %789 = vmatmul.msk.f32.gmra.mxu0 %vm73_vm0, %v64_v23  ;;  %797 = vmatmul.msk.f32.gmra.mxu1 %vm73_vm0, %v64_v23 }
 0x48f   :  { %790 = vmatmul.msk.f32.gmra.mxu0 %vm73_vm0, %v65_v24  ;;  %798 = vmatmul.msk.f32.gmra.mxu1 %vm73_vm0, %v65_v24 }
 0x497   :  { %791 = vmatmul.msk.f32.gmra.mxu0 %vm73_vm0, %v66_v60  ;;  %799 = vmatmul.msk.f32.gmra.mxu1 %vm73_vm0, %v66_v60 }
 0x49f   :  { %792 = vmatmul.msk.f32.gmra.mxu0 %vm73_vm0, %v67_v8  ;;  %800 = vmatmul.msk.f32.gmra.mxu1 %vm73_vm0, %v67_v8 }
 0x4fa   :  { %v434_v3 = vpop.f32.mrf.mxu2  ;;  %v454_v7 = vpop.f32.mrf.mxu3 }
 0x4fb   :  { %v457_v5 = vadd.f32 %v434_v3, %v125_v1  ;;  %v458_v11 = vadd.f32 %v454_v7, %v166_v4 }
 0x4fd   :  { %v459_v9 = vmul.f32 0.5, %v457_v5  ;;  %v464_v59 = vmul.f32 0.5, %v458_v11 }
 0x4ff   :  { %851 = vtanh.f32 %v459_v9 }
 0x500   :  { %853 = vtanh.f32 %v458_v11 }
 0x501   :  { %855 = vtanh.f32 %v464_v59 }
 0x504   :  { %v127_v19 = vpop.f32.mrf.mxu0  ;;  %v168_v22 = vpop.f32.mrf.mxu1 }
 0x505   :  { %v852_v13 = vpop.eup %851  ;;  %v128_v34 = vadd.f32 %v127_v19, %v1070_v27  ;;  %v169_v38 = vadd.f32 %v168_v22, %v1072_v29 }
 0x506   :  { %v461_v16 = vmul.f32 0.5, %v852_v13  ;;  %v854_v20 = vpop.eup %853 }
 0x507   :  { %v856_v63 = vpop.eup %855 }
 0x508   :  { %v462_v18 = vadd.f32 0.5, %v461_v16  ;;  %v466_v10 = vmul.f32 0.5, %v856_v63 }
 0x50a   :  { %v469_v21 = vmul.f32 %v854_v20, %v462_v18  ;;  %v468_v61 = vmul.f32 %v462_v18, %v402_v51  ;;  %v467_v12 = vadd.f32 0.5, %v466_v10 }
 0x50c   :  { %471 = vrot.lane.b32.xlu0 %v469_v21, %s921_s25  ;;  %v130_v25 = vpop.f32.mrf.mxu0  ;;  %v171_v26 = vpop.f32.mrf.mxu1 }
 0x50d   :  { %v131_v57 = vadd.f32 %v130_v25, %v1070_v27  ;;  %v172_v3 = vadd.f32 %v171_v26, %v1072_v29 }
 0x514   :  { %v1197_v28 = vpop.f32.mrf.mxu0  ;;  %v1199_v30 = vpop.f32.mrf.mxu1 }
 0x51c   :  { %v1201_v31 = vpop.f32.mrf.mxu0  ;;  %v1203_v33 = vpop.f32.mrf.mxu1 }
 0x57e   :  { %v472_v62 = vpop.permute.xlu0 %471 }
 0x57f   :  { %v474_v6 = vadd.f32 %v472_v62, %v468_v61 }
 0x581   :  { %857 = vtanh.f32 %v474_v6 }
 0x587   :  { %v858_v14 = vpop.eup %857 }
 0x588   :  { %v476_v15 = vmul.f32 %v858_v14, %v467_v12  ;;  %v175_v14 = vadd.f32 %v1199_v30, %v1072_v29 }
 0x58a   :  { %480 = vrot.lane.b32.xlu1 %v476_v15, %s921_s25 }
 0x5fc   :  { %v1191_v17 = vpop.permute.xlu1 %480 }
 0x5fd   :  { %810 = vmatmul.msk.f32.vlgmr.msrb.gmra.mxu0 %vm198_vm1, %v1191_v17  ;;  %811 = vmatmul.msk.f32.vlgmr.msrb.gmra.mxu1 %vm198_vm1, %v1191_v17 }
 0x67a   :  { %v506_v35 = vpop.f32.mrf.mxu0  ;;  %v526_v37 = vpop.f32.mrf.mxu1 }
 0x67b   :  { %v529_v36 = vadd.f32 %v506_v35, %v128_v34  ;;  %v530_v40 = vadd.f32 %v526_v37, %v169_v38 }
 0x67d   :  { %v531_v39 = vmul.f32 0.5, %v529_v36  ;;  %v536_v46 = vmul.f32 0.5, %v530_v40 }
 0x67f   :  { %859 = vtanh.f32 %v531_v39 }
 0x680   :  { %861 = vtanh.f32 %v530_v40 }
 0x681   :  { %863 = vtanh.f32 %v536_v46 }
 0x685   :  { %v860_v41 = vpop.eup %859 }
 0x686   :  { %v533_v42 = vmul.f32 0.5, %v860_v41  ;;  %v862_v44 = vpop.eup %861 }
 0x687   :  { %v864_v49 = vpop.eup %863 }
 0x688   :  { %v534_v43 = vadd.f32 0.5, %v533_v42  ;;  %v538_v51 = vmul.f32 0.5, %v864_v49 }
 0x68a   :  { %v541_v45 = vmul.f32 %v862_v44, %v534_v43  ;;  %v540_v47 = vmul.f32 %v534_v43, %v474_v6  ;;  %v539_v52 = vadd.f32 0.5, %v538_v51  ;;  %v134_v6 = vadd.f32 %v1197_v28, %v1070_v27 }
 0x68b   :  { %v137_v44 = vadd.f32 %v1201_v31, %v1070_v27 }
 0x68c   :  { %543 = vrot.lane.b32.xlu2 %v541_v45, %s921_s25 }
 0x6e6   :  { %v544_v48 = vpop.permute.xlu2 %543 }
 0x6e7   :  { %v546_v50 = vadd.f32 %v544_v48, %v540_v47  ;;  %v178_v48 = vadd.f32 %v1203_v33, %v1072_v29 }
 0x6e9   :  { %865 = vtanh.f32 %v546_v50 }
 0x6ef   :  { %v866_v54 = vpop.eup %865 }
 0x6f0   :  { %v548_v55 = vmul.f32 %v866_v54, %v539_v52 }
 0x6f2   :  { %552 = vrot.lane.b32.xlu0 %v548_v55, %s921_s25 }
 0x764   :  { %v1209_v56 = vpop.permute.xlu0 %552 }
 0x765   :  { %813 = vmatmul.msk.f32.vlgmr.msra.gmra.mxu2 %vm198_vm1, %v1209_v56  ;;  %814 = vmatmul.msk.f32.vlgmr.msra.gmra.mxu3 %vm198_vm1, %v1209_v56 }
 0x7e8   :  { %v578_v0 = vpop.f32.mrf.mxu2  ;;  %v598_v2 = vpop.f32.mrf.mxu3 }
 0x7e9   :  { %v601_v1 = vadd.f32 %v578_v0, %v131_v57  ;;  %v602_v5 = vadd.f32 %v598_v2, %v172_v3 }
 0x7eb   :  { %v603_v4 = vmul.f32 0.5, %v601_v1  ;;  %v608_v18 = vmul.f32 0.5, %v602_v5 }
 0x7ed   :  { %867 = vtanh.f32 %v603_v4 }
 0x7ee   :  { %869 = vtanh.f32 %v602_v5  ;;  %v803_v5 = vld [vmem:[%s1280_s1 + $0x8] sm:$0xff] }
 0x7ef   :  { %871 = vtanh.f32 %v608_v18 }
 0x7f3   :  { %v868_v7 = vpop.eup %867 }
 0x7f4   :  { %v605_v9 = vmul.f32 0.5, %v868_v7  ;;  %v870_v13 = vpop.eup %869  ;;  %v262_v7 = vld [vmem:[%s1280_s1] sm:$0xff] }
 0x7f5   :  { %v872_v23 = vpop.eup %871 }
 0x7f6   :  { %v606_v11 = vadd.f32 0.5, %v605_v9  ;;  %v610_v59 = vmul.f32 0.5, %v872_v23  ;;  %v806_v9 = vld [vmem:[%s1280_s1 + $0x10] sm:$0xff] }
 0x7f7   :  { %v411_v18 = vmul.f32 %v806_v9, %v1145_v58 }
 0x7f8   :  { %v613_v16 = vmul.f32 %v870_v13, %v606_v11  ;;  %v612_v20 = vmul.f32 %v606_v11, %v546_v50  ;;  %v611_v60 = vadd.f32 0.5, %v610_v59  ;;  %v339_v11 = vmul.f32 %v803_v5, %v1114_v32  ;;  %v809_v13 = vld [vmem:[%s1280_s1 + $0x18] sm:$0xff] }
 0x7f9   :  { %v483_v23 = vmul.f32 %v809_v13, %v1191_v17  ;;  %v821_v17 = vld [vmem:[%s1280_s1 + $0x38] sm:$0xff] }
 0x7fa   :  { %615 = vrot.lane.b32.xlu1 %v613_v16, %s921_s25  ;;  %v267_v16 = vmul.f32 %v1083_v53, %v262_v7  ;;  %v818_v53 = vld [vmem:[%s1280_s1 + $0x30] sm:$0xff] }
 0x86c   :  { %v616_v21 = vpop.permute.xlu1 %615 }
 0x86d   :  { %v618_v24 = vadd.f32 %v616_v21, %v612_v20  ;;  %v812_v20 = vld [vmem:[%s1280_s1 + $0x20] sm:$0xff]  ;;  %v340_v21 = vadd.f32 %v339_v11, %v267_v16 }
 0x86e   :  { %v555_v59 = vmul.f32 %v812_v20, %v1209_v56  ;;  %v58_v56 = vld [vmem:[%s1282_s3 + $0x1] ss:$0 sm:$0xff] }
 0x86f   :  { %873 = vtanh.f32 %v618_v24  ;;  %v412_v32 = vadd.f32 %v411_v18, %v340_v21 }
 0x875   :  { %v874_v61 = vpop.eup %873 }
 0x876   :  { %v620_v62 = vmul.f32 %v874_v61, %v611_v60  ;;  %v484_v60 = vadd.f32 %v483_v23, %v412_v32 }
 0x878   :  { %624 = vrot.lane.b32.xlu2 %v620_v62, %s921_s25  ;;  %v556_v61 = vadd.f32 %v555_v59, %v484_v60 }
 0x8d2   :  { %v1219_v63 = vpop.permute.xlu2 %624 }
 0x8d3   :  { %816 = vmatmul.msk.f32.vlgmr.msra.gmra.mxu0 %vm198_vm1, %v1219_v63  ;;  %817 = vmatmul.msk.f32.vlgmr.msra.gmra.mxu1 %vm198_vm1, %v1219_v63 }
 0x950   :  { %v650_v8 = vpop.f32.mrf.mxu0  ;;  %v670_v12 = vpop.f32.mrf.mxu1 }
 0x951   :  { %v673_v10 = vadd.f32 %v650_v8, %v134_v6  ;;  %v674_v19 = vadd.f32 %v670_v12, %v175_v14 }
 0x953   :  { %v675_v15 = vmul.f32 0.5, %v673_v10  ;;  %v680_v36 = vmul.f32 0.5, %v674_v19 }
 0x955   :  { %875 = vtanh.f32 %v675_v15 }
 0x956   :  { %877 = vtanh.f32 %v674_v19 }
 0x957   :  { %879 = vtanh.f32 %v680_v36 }
 0x95b   :  { %v876_v22 = vpop.eup %875 }
 0x95c   :  { %v677_v25 = vmul.f32 0.5, %v876_v22  ;;  %v878_v34 = vpop.eup %877 }
 0x95d   :  { %v880_v38 = vpop.eup %879 }
 0x95e   :  { %v678_v26 = vadd.f32 0.5, %v677_v25  ;;  %v682_v40 = vmul.f32 0.5, %v880_v38 }
 0x960   :  { %v685_v35 = vmul.f32 %v878_v34, %v678_v26  ;;  %v684_v28 = vmul.f32 %v678_v26, %v618_v24  ;;  %v683_v30 = vadd.f32 0.5, %v682_v40  ;;  %v815_v24 = vld [vmem:[%s1280_s1 + $0x28] sm:$0xff] }
 0x961   :  { %v627_v58 = vmul.f32 %v815_v24, %v1219_v63  ;;  %v59_v63 = vld [vmem:[%s1282_s3 + $0x2] ss:$0 sm:$0xff] }
 0x962   :  { %687 = vrot.lane.b32.xlu0 %v685_v35, %s921_s25 }
 0x963   :  { %v628_v6 = vadd.f32 %v627_v58, %v556_v61 }
 0x9d4   :  { %v688_v37 = vpop.permute.xlu0 %687 }
 0x9d5   :  { %v690_v39 = vadd.f32 %v688_v37, %v684_v28 }
 0x9d7   :  { %881 = vtanh.f32 %v690_v39 }
 0x9dd   :  { %v882_v41 = vpop.eup %881 }
 0x9de   :  { %v692_v42 = vmul.f32 %v882_v41, %v683_v30 }
 0x9e0   :  { %696 = vrot.lane.b32.xlu1 %v692_v42, %s921_s25 }
 0xa52   :  { %v697_v43 = vpop.permute.xlu1 %696 }
 0xa53   :  { %819 = vmatmul.msk.f32.vlgmr.msrb.gmra.mxu2 %vm198_vm1, %v697_v43  ;;  %820 = vmatmul.msk.f32.vlgmr.msrb.gmra.mxu3 %vm198_vm1, %v697_v43  ;;  %v699_v62 = vmul.f32 %v818_v53, %v697_v43 }
 0xa55   :  { %v700_v10 = vadd.f32 %v699_v62, %v628_v6 }
 0xad6   :  { %v722_v45 = vpop.f32.mrf.mxu2  ;;  %v742_v47 = vpop.f32.mrf.mxu3 }
 0xad7   :  { %v745_v46 = vadd.f32 %v722_v45, %v137_v44  ;;  %v746_v50 = vadd.f32 %v742_v47, %v178_v48 }
 0xad9   :  { %v747_v49 = vmul.f32 0.5, %v745_v46  ;;  %v752_v0 = vmul.f32 0.5, %v746_v50 }
 0xadb   :  { %883 = vtanh.f32 %v747_v49 }
 0xadc   :  { %885 = vtanh.f32 %v746_v50 }
 0xadd   :  { %887 = vtanh.f32 %v752_v0 }
 0xae1   :  { %v884_v51 = vpop.eup %883 }
 0xae2   :  { %v749_v52 = vmul.f32 0.5, %v884_v51  ;;  %v886_v55 = vpop.eup %885 }
 0xae3   :  { %v888_v1 = vpop.eup %887 }
 0xae4   :  { %v750_v54 = vadd.f32 0.5, %v749_v52  ;;  %v754_v3 = vmul.f32 0.5, %v888_v1 }
 0xae6   :  { %v757_v57 = vmul.f32 %v886_v55, %v750_v54  ;;  %v756_v27 = vmul.f32 %v750_v54, %v690_v39  ;;  %v755_v29 = vadd.f32 0.5, %v754_v3 }
 0xae8   :  { %759 = vrot.lane.b32.xlu2 %v757_v57, %s921_s25 }
 0xb42   :  { %v760_v31 = vpop.permute.xlu2 %759 }
 0xb43   :  { %v762_v2 = vadd.f32 %v760_v31, %v756_v27 }
 0xb45   :  { %889 = vtanh.f32 %v762_v2 }
 0xb4b   :  { %v890_v33 = vpop.eup %889 }
 0xb4c   :  { %v764_v4 = vmul.f32 %v890_v33, %v755_v29 }
 0xb4e   :  { %768 = vrot.lane.b32.xlu0 %v764_v4, %s921_s25 }
 0xbc0   :  { %v769_v8 = vpop.permute.xlu0 %768 }
 0xbc1   :  { %v771_v12 = vmul.f32 %v821_v17, %v769_v8 }
 0xbc3   :  { %v772_v14 = vadd.f32 %v771_v12, %v700_v10 }
 0xbc5   :  { %v773_v15 = vmul.f32 %v772_v14, %v58_v56 }
 0xbc7   :  { %v774_v19 = vsel %vm198_vm1, %v773_v15, 0.0 }
 0xbc8   :  { %775 = vadd.xlane.f32.xlu1 %v774_v19 }
 0xc3b   :  { %v776_v22 = vpop.xlane.xlu1 %775 }
 0xc3c   :  { %v777_v25 = vadd.f32 %v776_v22, %v59_v63 }
 0xc3e   :  { %779 = vst.msk [vmem:[%s1283_s4] sm:$0xff] %vm778_vm2, %v777_v25 }
 0xc3f   :  { %784 = vsyncpa [#allocation4], 1 }

</bundles_post_ra>
